<compile_context>
chip_gen: v6e
topology: v6e:2x2x1
jax: 0.10.0
libtpu: 0.0.40
codegen_flags: <defaults>
</compile_context>

<pallas_src>
import jax
import jax.numpy as jnp
from jax import lax
from jax.experimental import pallas as pl
from jax.experimental.pallas import tpu as pltpu


def _round_up(x, m):
    return (x + m - 1) // m * m


def autoencoder_kernel(x_ref,
                       w1_ref, b1_ref, w2_ref, b2_ref,
                       w3_ref, b3_ref, w4_ref, b4_ref,
                       xbar_ref, z_ref):
    """Whole forward pass (4 matmuls + ReLU + L2 normalize) for one batch tile."""
    dt = w1_ref.dtype            # matmul operand dtype (bf16 fast path if params are bf16)
    x = x_ref[...]               # keep native dtype; no f32 upcast of MXU operands

    # ---- encoder: Linear -> ReLU, Linear (no ReLU on last encoder layer) ----
    h1 = jnp.dot(x, w1_ref[...], preferred_element_type=jnp.float32)
    h1 = jnp.maximum(h1 + b1_ref[...].astype(jnp.float32), 0.0)
    z = jnp.dot(h1.astype(dt), w2_ref[...], preferred_element_type=jnp.float32)
    z = z + b2_ref[...].astype(jnp.float32)

    # ---- decoder: Linear -> ReLU, Linear (no ReLU on last decoder layer) ----
    h2 = jnp.dot(z.astype(dt), w3_ref[...], preferred_element_type=jnp.float32)
    h2 = jnp.maximum(h2 + b3_ref[...].astype(jnp.float32), 0.0)
    xb = jnp.dot(h2.astype(dt), w4_ref[...], preferred_element_type=jnp.float32)
    xb = xb + b4_ref[...].astype(jnp.float32)

    # ---- F.normalize(x_bar, dim=-1): x / max(||x||_2, eps), eps = 1e-12 ----
    # Implemented as x * rsqrt(max(||x||^2, eps^2)) -> EUP rsqrt, no VPU divide.
    sumsq = jnp.sum(xb * xb, axis=-1, keepdims=True)
    inv_norm = lax.rsqrt(jnp.maximum(sumsq, 1e-24))
    xbar_ref[...] = (xb * inv_norm).astype(xbar_ref.dtype)
    z_ref[...] = z.astype(z_ref.dtype)


def _choose_tiling(B, D, itemsize, tb):
    """Pick (tb, n_steps, Bp): big tiles, even step count >= 2, small padding."""
    sub = (8 * 4) // itemsize            # sublane packing: 8 rows f32, 16 rows bf16
    if tb is None:
        # Target ~1 MiB of x-bytes per grid step so DMA, not the ~600-cycle
        # per-step overhead, sets the pace.
        tb = (1 << 20) // max(1, D * itemsize)
    # Cap at 4096 rows: keeps f32 intermediates + double-buffered I/O well
    # under v5e's 16 MiB scoped-VMEM default (and v7x's 64 MiB physical VMEM).
    tb = max(sub, min(tb, 4096))
    tb = _round_up(tb, sub)
    # Even number of grid steps (>= 2) so v7x's two TensorCores get equal work.
    n_steps = _round_up(max(2, pl.cdiv(B, tb)), 2)
    # Re-derive tb for that step count to minimize padding waste.
    tb = _round_up(pl.cdiv(B, n_steps), sub)
    return tb, n_steps, tb * n_steps


def autoencoder_forward(x, params, *, tb=None, buffer_count=2, vmem_limit_bytes=None):
    """params: list of 4 (W, b) pairs; W is (in, out), b is (1, out)."""
    B, D = x.shape
    z_dim = params[1][0].shape[1]  # output dim of last encoder layer
    out_dtype = x.dtype
    itemsize = jnp.dtype(x.dtype).itemsize

    tb, n_steps, Bp = _choose_tiling(B, D, itemsize, tb)

    # Batch remainder / even-step padding: pad rows, slice outputs back after.
    # Padded rows pass safely through the normalize (eps clamp avoids NaN).
    if Bp != B:
        x = jnp.pad(x, ((0, Bp - B), (0, 0)))
    grid = (n_steps,)

    def stream_spec(shape, index_map):
        # Streamed (per-grid-step) operands; optionally triple-buffered when
        # xprof shows exposed DMA even with the large tiles.
        if buffer_count == 2:
            return pl.BlockSpec(shape, index_map)
        return pl.BlockSpec(shape, index_map, pipeline_mode=pl.Buffered(buffer_count))

    def weight_spec(arr):
        # Full-array block with a constant index_map -> block index never
        # changes, so the (tiny) weights stay resident in VMEM.
        return pl.BlockSpec(arr.shape, lambda i: (0, 0))

    in_specs = [stream_spec((tb, D), lambda i: (i, 0))]
    flat_args = [x]
    for w, b in params:
        in_specs.append(weight_spec(w))
        in_specs.append(weight_spec(b))
        flat_args += [w, b]

    out_specs = (stream_spec((tb, D), lambda i: (i, 0)),
                 stream_spec((tb, z_dim), lambda i: (i, 0)))
    out_shape = (jax.ShapeDtypeStruct((Bp, D), out_dtype),
                 jax.ShapeDtypeStruct((Bp, z_dim), out_dtype))

    x_bar, z = pl.pallas_call(
        autoencoder_kernel,
        grid=grid,
        in_specs=in_specs,
        out_specs=out_specs,
        out_shape=out_shape,
        compiler_params=pltpu.CompilerParams(
            dimension_semantics=("parallel",),
            vmem_limit_bytes=vmem_limit_bytes,
        ),
    )(*flat_args)

    if Bp != B:
        x_bar = x_bar[:B]
        z = z[:B]
    return x_bar, z


def init_params(key, input_dim, hidden_dims):
    """Deterministic PyTorch-style Linear init: U(-1/sqrt(fan_in), 1/sqrt(fan_in))."""
    enc_dims = [input_dim] + hidden_dims                   # encoder layer sizes
    dec_dims = list(reversed(hidden_dims)) + [input_dim]   # decoder layer sizes
    layer_dims = list(zip(enc_dims[:-1], enc_dims[1:])) + \
                 list(zip(dec_dims[:-1], dec_dims[1:]))
    params = []
    for (din, dout) in layer_dims:
        key, kw, kb = jax.random.split(key, 3)
        bound = 1.0 / (din ** 0.5)
        w = jax.random.uniform(kw, (din, dout), jnp.float32, -bound, bound)
        b = jax.random.uniform(kb, (1, dout), jnp.float32, -bound, bound)
        params.append((w, b))
    return params


def reference_forward(x, params):
    """Plain-JAX (f32) reference of the same forward for a sanity check."""
    (w1, b1), (w2, b2), (w3, b3), (w4, b4) = params
    h = jnp.maximum(x @ w1 + b1, 0.0)
    z = h @ w2 + b2
    h = jnp.maximum(z @ w3 + b3, 0.0)
    xb = h @ w4 + b4
    denom = jnp.maximum(jnp.sqrt(jnp.sum(xb * xb, axis=-1, keepdims=True)), 1e-12)
    return xb / denom, z


if __name__ == "__main__":
    # Module shapes: input_dim=32, hidden_dims=[64, 16]
    #   encoder: Linear(32,64)+ReLU, Linear(64,16)
    #   decoder: Linear(16,64)+ReLU, Linear(64,32), then L2-normalize(dim=-1)
    input_dim = 32
    hidden_dims = [64, 16]

    key = jax.random.PRNGKey(0)
    key, kx = jax.random.split(key)
    params = init_params(key, input_dim, hidden_dims)

    # ---- small f32 run: strict correctness check (2 grid steps of 8 rows) ----
    B = 16
    x = jax.random.normal(kx, (B, input_dim), jnp.float32)
    x_bar, z = jax.block_until_ready(autoencoder_forward(x, params))
    x_bar_ref, z_ref = reference_forward(x, params)
    assert x_bar.shape == (B, input_dim) and z.shape == (B, hidden_dims[-1])
    assert jnp.allclose(x_bar, x_bar_ref, atol=1e-5, rtol=1e-4)
    assert jnp.allclose(z, z_ref, atol=1e-5, rtol=1e-4)

    # ---- larger, non-divisible batch in bf16: exercises padding, adaptive
    #      tiles, even parallel grid steps, and the bf16 MXU operand path ----
    B2 = 1000
    key, kx2 = jax.random.split(key)
    x2 = jax.random.normal(kx2, (B2, input_dim), jnp.float32)
    params_bf16 = [(w.astype(jnp.bfloat16), b.astype(jnp.bfloat16)) for w, b in params]
    xb2, z2 = jax.block_until_ready(
        autoencoder_forward(x2.astype(jnp.bfloat16), params_bf16))
    xb2_ref, z2_ref = reference_forward(x2, params)
    assert xb2.shape == (B2, input_dim) and z2.shape == (B2, hidden_dims[-1])
    assert jnp.allclose(xb2.astype(jnp.float32), xb2_ref, atol=5e-2, rtol=5e-2)
    assert jnp.allclose(z2.astype(jnp.float32), z2_ref, atol=5e-2, rtol=5e-2)

    print("KERNEL_OK")
</pallas_src>

<mosaic_0001>
module attributes {stable_mosaic.version = 11 : i64} {
  func.func @autoencoder_kernel(%arg0: i32, %arg1: memref<8x32xf32, #tpu.memory_space<vmem>>, %arg2: memref<32x64xf32, #tpu.memory_space<vmem>>, %arg3: memref<1x64xf32, #tpu.memory_space<vmem>>, %arg4: memref<64x16xf32, #tpu.memory_space<vmem>>, %arg5: memref<1x16xf32, #tpu.memory_space<vmem>>, %arg6: memref<16x64xf32, #tpu.memory_space<vmem>>, %arg7: memref<1x64xf32, #tpu.memory_space<vmem>>, %arg8: memref<64x32xf32, #tpu.memory_space<vmem>>, %arg9: memref<1x32xf32, #tpu.memory_space<vmem>>, %arg10: memref<8x32xf32, #tpu.memory_space<vmem>>, %arg11: memref<8x16xf32, #tpu.memory_space<vmem>>) attributes {dimension_semantics = [#tpu.dimension_semantics<parallel>], iteration_bounds = array<i64: 2>, scalar_prefetch = 0 : i64, scratch_operands = 0 : i64, tpu.core_type = #tpu.core_type<tc>, window_params = [{transform_indices = @transform_0, window_bounds = array<i64: 8, 32>}, {pipeline_mode = #tpu.pipeline_mode<synchronous>, transform_indices = @transform_1, window_bounds = array<i64: 32, 64>}, {pipeline_mode = #tpu.pipeline_mode<synchronous>, transform_indices = @transform_2, window_bounds = array<i64: 1, 64>}, {pipeline_mode = #tpu.pipeline_mode<synchronous>, transform_indices = @transform_3, window_bounds = array<i64: 64, 16>}, {pipeline_mode = #tpu.pipeline_mode<synchronous>, transform_indices = @transform_4, window_bounds = array<i64: 1, 16>}, {pipeline_mode = #tpu.pipeline_mode<synchronous>, transform_indices = @transform_5, window_bounds = array<i64: 16, 64>}, {pipeline_mode = #tpu.pipeline_mode<synchronous>, transform_indices = @transform_6, window_bounds = array<i64: 1, 64>}, {pipeline_mode = #tpu.pipeline_mode<synchronous>, transform_indices = @transform_7, window_bounds = array<i64: 64, 32>}, {pipeline_mode = #tpu.pipeline_mode<synchronous>, transform_indices = @transform_8, window_bounds = array<i64: 1, 32>}, {transform_indices = @transform_9, window_bounds = array<i64: 8, 32>}, {transform_indices = @transform_10, window_bounds = array<i64: 8, 16>}]} {
    %c0 = arith.constant 0 : index
    %c0_0 = arith.constant 0 : index
    %0 = vector.load %arg1[%c0, %c0_0] : memref<8x32xf32, #tpu.memory_space<vmem>>, vector<8x32xf32>
    %c0_1 = arith.constant 0 : index
    %c0_2 = arith.constant 0 : index
    %1 = vector.load %arg2[%c0_1, %c0_2] : memref<32x64xf32, #tpu.memory_space<vmem>>, vector<32x64xf32>
    %cst = arith.constant dense<0.000000e+00> : vector<8x64xf32>
    %2 = tpu.matmul %0, %1, %cst {dimension_numbers = #tpu.dot_dimension_numbers<[1], [0], [0], [1], [0, 0, 1, 1], [], []>} : vector<8x32xf32>, vector<32x64xf32>, vector<8x64xf32> -> vector<8x64xf32>
    %c0_3 = arith.constant 0 : index
    %c0_4 = arith.constant 0 : index
    %3 = vector.load %arg3[%c0_3, %c0_4] : memref<1x64xf32, #tpu.memory_space<vmem>>, vector<1x64xf32>
    %4 = vector.broadcast %3 : vector<1x64xf32> to vector<8x64xf32>
    %5 = arith.addf %2, %4 : vector<8x64xf32>
    %cst_5 = arith.constant 0.000000e+00 : f32
    %6 = vector.broadcast %cst_5 : f32 to vector<8x64xf32>
    %7 = arith.maximumf %5, %6 : vector<8x64xf32>
    %c0_6 = arith.constant 0 : index
    %c0_7 = arith.constant 0 : index
    %8 = vector.load %arg4[%c0_6, %c0_7] : memref<64x16xf32, #tpu.memory_space<vmem>>, vector<64x16xf32>
    %cst_8 = arith.constant dense<0.000000e+00> : vector<8x16xf32>
    %9 = tpu.matmul %7, %8, %cst_8 {dimension_numbers = #tpu.dot_dimension_numbers<[1], [0], [0], [1], [0, 0, 1, 1], [], []>} : vector<8x64xf32>, vector<64x16xf32>, vector<8x16xf32> -> vector<8x16xf32>
    %c0_9 = arith.constant 0 : index
    %c0_10 = arith.constant 0 : index
    %10 = vector.load %arg5[%c0_9, %c0_10] : memref<1x16xf32, #tpu.memory_space<vmem>>, vector<1x16xf32>
    %11 = vector.broadcast %10 : vector<1x16xf32> to vector<8x16xf32>
    %12 = arith.addf %9, %11 : vector<8x16xf32>
    %c0_11 = arith.constant 0 : index
    %c0_12 = arith.constant 0 : index
    %13 = vector.load %arg6[%c0_11, %c0_12] : memref<16x64xf32, #tpu.memory_space<vmem>>, vector<16x64xf32>
    %cst_13 = arith.constant dense<0.000000e+00> : vector<8x64xf32>
    %14 = tpu.matmul %12, %13, %cst_13 {dimension_numbers = #tpu.dot_dimension_numbers<[1], [0], [0], [1], [0, 0, 1, 1], [], []>} : vector<8x16xf32>, vector<16x64xf32>, vector<8x64xf32> -> vector<8x64xf32>
    %c0_14 = arith.constant 0 : index
    %c0_15 = arith.constant 0 : index
    %15 = vector.load %arg7[%c0_14, %c0_15] : memref<1x64xf32, #tpu.memory_space<vmem>>, vector<1x64xf32>
    %16 = vector.broadcast %15 : vector<1x64xf32> to vector<8x64xf32>
    %17 = arith.addf %14, %16 : vector<8x64xf32>
    %cst_16 = arith.constant 0.000000e+00 : f32
    %18 = vector.broadcast %cst_16 : f32 to vector<8x64xf32>
    %19 = arith.maximumf %17, %18 : vector<8x64xf32>
    %c0_17 = arith.constant 0 : index
    %c0_18 = arith.constant 0 : index
    %20 = vector.load %arg8[%c0_17, %c0_18] : memref<64x32xf32, #tpu.memory_space<vmem>>, vector<64x32xf32>
    %cst_19 = arith.constant dense<0.000000e+00> : vector<8x32xf32>
    %21 = tpu.matmul %19, %20, %cst_19 {dimension_numbers = #tpu.dot_dimension_numbers<[1], [0], [0], [1], [0, 0, 1, 1], [], []>} : vector<8x64xf32>, vector<64x32xf32>, vector<8x32xf32> -> vector<8x32xf32>
    %c0_20 = arith.constant 0 : index
    %c0_21 = arith.constant 0 : index
    %22 = vector.load %arg9[%c0_20, %c0_21] : memref<1x32xf32, #tpu.memory_space<vmem>>, vector<1x32xf32>
    %23 = vector.broadcast %22 : vector<1x32xf32> to vector<8x32xf32>
    %24 = arith.addf %21, %23 : vector<8x32xf32>
    %25 = arith.mulf %24, %24 : vector<8x32xf32>
    %cst_22 = arith.constant dense<0.000000e+00> : vector<8xf32>
    %26 = vector.multi_reduction <add>, %25, %cst_22 [1] : vector<8x32xf32> to vector<8xf32>
    %27 = vector.shape_cast %26 : vector<8xf32> to vector<8x1xf32>
    %cst_23 = arith.constant 1.000000e-24 : f32
    %28 = vector.broadcast %cst_23 : f32 to vector<8x1xf32>
    %29 = arith.maximumf %27, %28 : vector<8x1xf32>
    %30 = math.rsqrt %29 : vector<8x1xf32>
    %31 = vector.broadcast %30 : vector<8x1xf32> to vector<8x32xf32>
    %32 = arith.mulf %24, %31 : vector<8x32xf32>
    %c0_24 = arith.constant 0 : index
    %c0_25 = arith.constant 0 : index
    %33 = vector.load %arg10[%c0_24, %c0_25] : memref<8x32xf32, #tpu.memory_space<vmem>>, vector<8x32xf32>
    tpu.vector_store %arg10[%c0_24, %c0_25], %32 {strides = array<i32>} : memref<8x32xf32, #tpu.memory_space<vmem>>, vector<8x32xf32>,
    %c0_26 = arith.constant 0 : index
    %c0_27 = arith.constant 0 : index
    %34 = vector.load %arg11[%c0_26, %c0_27] : memref<8x16xf32, #tpu.memory_space<vmem>>, vector<8x16xf32>
    tpu.vector_store %arg11[%c0_26, %c0_27], %12 {strides = array<i32>} : memref<8x16xf32, #tpu.memory_space<vmem>>, vector<8x16xf32>,
    return
  }
  func.func @transform_0(%arg0: i32) -> (i32, i32) {
    %c0_i32 = arith.constant 0 : i32
    %c0_i32_0 = arith.constant 0 : i32
    return %arg0, %c0_i32 : i32, i32
  }
  func.func @transform_1(%arg0: i32) -> (i32, i32) {
    %c0_i32 = arith.constant 0 : i32
    %c0_i32_0 = arith.constant 0 : i32
    %c0_i32_1 = arith.constant 0 : i32
    return %c0_i32, %c0_i32_0 : i32, i32
  }
  func.func @transform_2(%arg0: i32) -> (i32, i32) {
    %c0_i32 = arith.constant 0 : i32
    %c0_i32_0 = arith.constant 0 : i32
    %c0_i32_1 = arith.constant 0 : i32
    return %c0_i32, %c0_i32_0 : i32, i32
  }
  func.func @transform_3(%arg0: i32) -> (i32, i32) {
    %c0_i32 = arith.constant 0 : i32
    %c0_i32_0 = arith.constant 0 : i32
    %c0_i32_1 = arith.constant 0 : i32
    return %c0_i32, %c0_i32_0 : i32, i32
  }
  func.func @transform_4(%arg0: i32) -> (i32, i32) {
    %c0_i32 = arith.constant 0 : i32
    %c0_i32_0 = arith.constant 0 : i32
    %c0_i32_1 = arith.constant 0 : i32
    return %c0_i32, %c0_i32_0 : i32, i32
  }
  func.func @transform_5(%arg0: i32) -> (i32, i32) {
    %c0_i32 = arith.constant 0 : i32
    %c0_i32_0 = arith.constant 0 : i32
    %c0_i32_1 = arith.constant 0 : i32
    return %c0_i32, %c0_i32_0 : i32, i32
  }
  func.func @transform_6(%arg0: i32) -> (i32, i32) {
    %c0_i32 = arith.constant 0 : i32
    %c0_i32_0 = arith.constant 0 : i32
    %c0_i32_1 = arith.constant 0 : i32
    return %c0_i32, %c0_i32_0 : i32, i32
  }
  func.func @transform_7(%arg0: i32) -> (i32, i32) {
    %c0_i32 = arith.constant 0 : i32
    %c0_i32_0 = arith.constant 0 : i32
    %c0_i32_1 = arith.constant 0 : i32
    return %c0_i32, %c0_i32_0 : i32, i32
  }
  func.func @transform_8(%arg0: i32) -> (i32, i32) {
    %c0_i32 = arith.constant 0 : i32
    %c0_i32_0 = arith.constant 0 : i32
    %c0_i32_1 = arith.constant 0 : i32
    return %c0_i32, %c0_i32_0 : i32, i32
  }
  func.func @transform_9(%arg0: i32) -> (i32, i32) {
    %c0_i32 = arith.constant 0 : i32
    %c0_i32_0 = arith.constant 0 : i32
    return %arg0, %c0_i32 : i32, i32
  }
  func.func @transform_10(%arg0: i32) -> (i32, i32) {
    %c0_i32 = arith.constant 0 : i32
    %c0_i32_0 = arith.constant 0 : i32
    return %arg0, %c0_i32 : i32, i32
  }
}

</mosaic_0001>

<bundles_post_ra>
// kernel: tpu_custom_call.1
= control target key start
LH: loop header
LB: loop body
LE: loop exit
PB: predicated region body
PF: predicated region fallthrough
CT: control target
= control target key end

     0   :  { %s1380_s0 = inlined_call_operand.vmem [shape: f32[16,32], index: 0, kind: input, shape index: {}]   ;;  %s1381_s1 = inlined_call_operand.vmem [shape: f32[32,64], index: 1, kind: input, shape index: {}]   ;;  %s1382_s2 = inlined_call_operand.vmem [shape: f32[1,64], index: 2, kind: input, shape index: {}]   ;;  %s1383_s3 = inlined_call_operand.vmem [shape: f32[64,16], index: 3, kind: input, shape index: {}]   ;;  %s1384_s4 = inlined_call_operand.vmem [shape: f32[1,16], index: 4, kind: input, shape index: {}]   ;;  %s1385_s5 = inlined_call_operand.vmem [shape: f32[16,64], index: 5, kind: input, shape index: {}]   ;;  %s1386_s6 = inlined_call_operand.vmem [shape: f32[1,64], index: 6, kind: input, shape index: {}]   ;;  %s1387_s7 = inlined_call_operand.vmem [shape: f32[64,32], index: 7, kind: input, shape index: {}]   ;;  %s1388_s8 = inlined_call_operand.vmem [shape: f32[1,32], index: 8, kind: input, shape index: {}]   ;;  %s1389_s9 = inlined_call_operand.hbm [shape: f32[16,32], index: 9, kind: output, shape index: {0}]   ;;  %s1390_s10 = inlined_call_operand.hbm [shape: f32[16,16], index: 10, kind: output, shape index: {1}]  }
   0x1   :  { %1393 = sst [smem:[#allocation8_spill]] %s1380_s0 }
   0x2   :  { %1394 = sst [smem:[#allocation9_spill]] %s1381_s1 }
   0x3   :  { %1395 = sst [smem:[#allocation10_spill]] %s1382_s2 }
   0x4   :  { %16 = vsyncpa [#allocation3], 0 }
   0x5   :  { %18 = vsyncpa [#allocation3 + $0x1], 0 }
   0x6   :  { %19 = vsyncpa [#allocation5], 0 }
   0x7   :  { %21 = vsyncpa [#allocation5 + $0x1], 0  ;;  %s1148_s13 = smov 0   ;;  %s1150_s14 = smov 0  }
   0x8   :  { %s1152_s15 = smov 0   ;;  %s1154_s16 = smov 0  }
   0x9 LB: > { %s1169_s17 = sadd.s32 4294967295, %s1087_s16   ;;  %s846_s18 = sadd.s32 4294967294, %s1087_s16   ;;  %s1087_s16 = sphi %s1154_s16, %s1406_s16   ;;  %s1083_s15 = sphi %s1152_s15, %s1405_s15   ;;  %s1079_s14 = sphi %s1150_s14, %s1404_s14   ;;  %s1075_s13 = sphi %s1148_s13, %s1403_s13  }
   0xa   : > { %s1173_s19 = sadd.s32 1, %s1087_s16   ;;  %s228_s20 = sadd.s32 1, %s1083_s15 }
   0xb   : > { %s225_s21 = ssub.s32 %s1087_s16, %s1173_s19  ;;  %p238_p0 = scmp.ne.s32.totalorder %s1083_s15, %s1079_s14 }
   0xc   : > { %p226_p1 = scmp.eq.s32.totalorder %s225_s21, 0  ;;  %p239_p2 = scmp.eq.s32.totalorder %s1169_s17, 1 }
   0xd   : > { %p244_p3 = scmp.ne.s32.totalorder %s1079_s14, %s1075_s13  ;;  %p245_p4 = scmp.eq.s32.totalorder %s846_s18, 1 }
   0xe   : > { %s1184_s22 = scalar_select %p226_p1, %s1083_s15, %s228_s20  }
   0xf   : > { %p1186_p5 = por %p239_p2, %p238_p0  ;;  %p1190_p6 = por %p245_p4, %p244_p3 }
  0x10   : > { %p849_p7 = scmp.ge.s32.totalorder %s1087_s16, 1  ;;  %p320_p8 = scmp.lt.s32.totalorder %s1087_s16, 3 }
  0x12   : > { %p321_p9 = pnand %p849_p7, %p320_p8 }
  0x13   : > { %s1398_s1 = sld [smem:[#allocation9_spill]] (!%p321_p9)  ;;  %p362_p10 = scmp.lt.s32.totalorder (!%p321_p9), %s1169_s17, 1 }
  0x14   : > { %324 = sbr.rel (%p321_p9) target bundleno = 990 (0x3de), region = 56  ;;  %s1399_s0 = sld [smem:[#allocation8_spill]] (!%p321_p9) }
  0x15   : > { %s1400_s2 = sld [smem:[#allocation10_spill]] (!%p321_p9)  ;;  %s1270_s27 = sand.u32 (!%p321_p9), 1, %s1079_s14  }
  0x16   : > { %s1391_s28 = sshll.u32 (!%p321_p9), %s1270_s27, 3  ;;  %s1392_s25 = sshll.u32 (!%p321_p9), %s1169_s17, 7 }
  0x17   : > { %s1284_s21 = scalar_lea.vmem (!%p321_p9), [#allocation4], %s1391_s28  ;;  %s753_s30 = scalar_lea.hbm (!%p321_p9), %s1390_s10, %s1392_s25 }
  0x18   : > { %s755_s11 = sshll.u32 (!%p321_p9), %s1284_s21, 4  ;;  %s1091_s18 = smov (!%p321_p9), [#allocation4]   ;;  %s756_s11 = int_to_ptr.vmem [resolvable:$true] %s755_s11 }
  0x19   : > { %v370_v0 = vld [vmem:[%s1398_s1 + $0x18] sm:$0xff]  ;;  %v1089_v1 = vmov 0.0   ;;  %v369_v2 = vld [vmem:[%s1398_s1 + $0x10] sm:$0xff]  ;;  %vm1090_vm0 = vmmov 0   ;;  %s363_s29 = scalar_select %p362_p10, %s1169_s17, 1  ;;  %v368_v3 = vld [vmem:[%s1398_s1 + $0x8] sm:$0xff] }
  0x1a   : > { %893 = vmatprep.subr.mxu1 %v1089_v1  ;;  %901 = vmatprep.mubr.msk.f32.mxu1 %vm1090_vm0, %v1089_v1  ;;  %v367_v4 = vld [vmem:[%s1398_s1] sm:$0xff]  ;;  %vm378_vm1 = vcmask 261120   ;;  %v460_v6 = vld [vmem:[%s1383_s3 + $0x38] sm:$0xff]  ;;  %v459_v7 = vld [vmem:[%s1383_s3 + $0x30] sm:$0xff]  ;;  %vm468_vm2 = vcmask 523264   ;;  %vm551_vm3 = vcmask 130048  }
  0x1b   : > { %894 = vmatpush3.msra.mxu1 %v370_v0  ;;  %923 = vmatprep.subr.mxu0 %v1089_v1  ;;  %s852_s12 = sshll.u32 %s363_s29, 3  ;;  %v458_v8 = vld [vmem:[%s1383_s3 + $0x28] sm:$0xff]  ;;  %v457_v9 = vld [vmem:[%s1383_s3 + $0x20] sm:$0xff]  ;;  %v456_v10 = vld [vmem:[%s1383_s3 + $0x18] sm:$0xff]  ;;  %s997_s28 = scalar_lea.vmem %s756_s11, 128 }
  0x1c   : > { %895 = vmatprep.subr.mxu1 %v1089_v1  ;;  %927 = vmatprep.mubr.msk.f32.mxu0 %vm1090_vm0, %v1089_v1  ;;  %s365_s26 = scalar_lea.vmem %s1399_s0, %s852_s12  ;;  %v455_v11 = vld [vmem:[%s1383_s3 + $0x10] sm:$0xff]  ;;  %v454_v12 = vld [vmem:[%s1383_s3 + $0x8] sm:$0xff]  ;;  %v453_v13 = vld [vmem:[%s1383_s3] sm:$0xff]  ;;  %s729_s12 = scalar_lea.sflag [#allocation5], %s1270_s27 }
  0x1d   : > { %896 = vmatpush3.msra.mxu1 %v369_v2  ;;  %v366_v5 = vld [vmem:[%s365_s26] sm:$0xff]  ;;  %v543_v19 = vld [vmem:[%s1385_s5 + $0x8] sm:$0xff]  ;;  %v633_v24 = vld [vmem:[%s1387_s7 + $0x38] sm:$0xff]  ;;  %p998_p11 = scmp.ne.s32.totalorder %s756_s11, %s997_s28  ;;  %s1001_s20 = sshll.u32 %s1091_s18, 4  ;;  %s1002_s20 = int_to_ptr.vmem [resolvable:$false] %s1001_s20 }
  0x1e   : > { %897 = vmatprep.subr.mxu1 %v1089_v1  ;;  %v853_v14 = vld [vmem:[%s1400_s2] ss:$0 sm:$0xff]  ;;  %924 = vmatpush3.msra.mxu0 %v543_v19  ;;  %v632_v26 = vld [vmem:[%s1387_s7 + $0x30] sm:$0xff]  ;;  %v631_v27 = vld [vmem:[%s1387_s7 + $0x28] sm:$0xff]  ;;  %s1003_s0 = scalar_lea.vmem %s1002_s20, 256  ;;  %p1004_p0 = scmp.lt.s32.totalorder %s756_s11, %s1002_s20 }
  0x1f   : > { %898 = vmatpush3.msra.mxu1 %v368_v3  ;;  %925 = vmatprep.subr.mxu0 %v1089_v1  ;;  %v542_v20 = vld [vmem:[%s1385_s5] sm:$0xff]  ;;  %v629_v29 = vld [vmem:[%s1387_s7 + $0x18] sm:$0xff]  ;;  %v628_v30 = vld [vmem:[%s1387_s7 + $0x10] sm:$0xff]  ;;  %p999_p12 = pnand %p998_p11, %p1186_p5  ;;  %p1005_p1 = scmp.lt.s32.totalorder %s1003_s0, %s997_s28 }
  0x20   : > { %899 = vmatprep.subr.mxu1 %v1089_v1  ;;  %926 = vmatpush3.msra.mxu0 %v542_v20  ;;  %v855_v21 = vld [vmem:[%s1384_s4] ss:$0 sm:$0xff]  ;;  %v627_v31 = vld [vmem:[%s1387_s7 + $0x8] sm:$0xff] }
  0x21   : > { %900 = vmatpush3.msra.mxu1 %v367_v4  ;;  %930 = vmatprep.subr.mxu0 %v1089_v1  ;;  %v630_v28 = vld [vmem:[%s1387_s7 + $0x20] sm:$0xff]  ;;  %p1000_p13 = pneg %p999_p12  ;;  %p1006_p2 = por %p1005_p1, %p1004_p0 }
  0x22   : > { %902 = vmatmul.mubr.msk.f32.vlgmr.msra.gmra.mxu1 %vm378_vm1, %v366_v5  ;;  %904 = vmatprep.subr.mxu1 %v1089_v1  ;;  %v626_v32 = vld [vmem:[%s1387_s7] sm:$0xff] }
  0x23   : > { %905 = vmatpush3.msra.mxu1 %v460_v6  ;;  %920 = vmatprep.mubr.msk.f32.mxu1 %vm1090_vm0, %v1089_v1  ;;  %v857_v33 = vld [vmem:[%s1386_s6] ss:$0 sm:$0xff]  ;;  %p1007_p3 = pnand %p1006_p2, %p1000_p13 }
  0x24   : > { %906 = vmatprep.subr.mxu1 %v1089_v1  ;;  %v859_v38 = vld [vmem:[%s1388_s8] ss:$0 sm:$0xff] }
  0x25   : > { %907 = vmatpush3.msra.mxu1 %v459_v7 }
  0x26   : > { %908 = vmatprep.subr.mxu1 %v1089_v1 }
  0x27   : > { %909 = vmatpush3.msra.mxu1 %v458_v8 }
  0x28   : > { %910 = vmatprep.subr.mxu1 %v1089_v1 }
  0x29   : > { %911 = vmatpush3.msra.mxu1 %v457_v9 }
  0x2a   : > { %912 = vmatprep.subr.mxu1 %v1089_v1 }
  0x2b   : > { %913 = vmatpush3.msra.mxu1 %v456_v10 }
  0x2c   : > { %914 = vmatprep.subr.mxu1 %v1089_v1 }
  0x2d   : > { %915 = vmatpush3.msra.mxu1 %v455_v11 }
  0x2e   : > { %916 = vmatprep.subr.mxu1 %v1089_v1 }
  0x2f   : > { %917 = vmatpush3.msra.mxu1 %v454_v12 }
  0x30   : > { %918 = vmatprep.subr.mxu1 %v1089_v1 }
  0x31   : > { %919 = vmatpush3.msra.mxu1 %v453_v13 }
  0xe2   : > { %v448_v15 = vpop.f32.mrf.mxu1 }
  0xe3   : > { %v449_v16 = vadd.f32 %v853_v14, %v448_v15 }
  0xe4   : > { %v903_v17 = vpop.f32.mrf.mxu1 }
  0xe5   : > { %v452_v18 = vmax.f32 %v449_v16, 0.0 }
  0xe7   : > { %921 = vmatmul.mubr.msk.f32.vlgmr.msra.gmra.mxu1 %vm468_vm2, %v452_v18 }
 0x1a7   : > { %v538_v22 = vpop.f32.mrf.mxu1 }
 0x1a8   : > { %v539_v23 = vadd.f32 %v855_v21, %v538_v22 }
 0x1a9   : > { %v922_v25 = vpop.f32.mrf.mxu1 }
 0x1aa   : > { %928 = vmatmul.mubr.msk.f32.vlgmr.msra.gmra.mxu0 %vm551_vm3, %v539_v23  ;;  %722 = vst.msk [vmem:[%s1284_s21] sm:$0xff] %vm551_vm3, %v539_v23 }
 0x1ab   : > { %931 = vmatpush3.msra.mxu0 %v633_v24  ;;  %946 = vmatprep.mubr.msk.f32.mxu0 %vm1090_vm0, %v1089_v1 }
 0x1ac   : > { %932 = vmatprep.subr.mxu0 %v1089_v1 }
 0x1ad   : > { %933 = vmatpush3.msra.mxu0 %v632_v26 }
 0x1ae   : > { %934 = vmatprep.subr.mxu0 %v1089_v1 }
 0x1af   : > { %935 = vmatpush3.msra.mxu0 %v631_v27 }
 0x1b0   : > { %936 = vmatprep.subr.mxu0 %v1089_v1 }
 0x1b1   : > { %937 = vmatpush3.msra.mxu0 %v630_v28 }
 0x1b2   : > { %938 = vmatprep.subr.mxu0 %v1089_v1 }
 0x1b3   : > { %939 = vmatpush3.msra.mxu0 %v629_v29 }
 0x1b4   : > { %940 = vmatprep.subr.mxu0 %v1089_v1 }
 0x1b5   : > { %941 = vmatpush3.msra.mxu0 %v628_v30 }
 0x1b6   : > { %942 = vmatprep.subr.mxu0 %v1089_v1 }
 0x1b7   : > { %943 = vmatpush3.msra.mxu0 %v627_v31 }
 0x1b8   : > { %944 = vmatprep.subr.mxu0 %v1089_v1 }
 0x1b9   : > { %945 = vmatpush3.msra.mxu0 %v626_v32 }
 0x26a   : > { %v621_v34 = vpop.f32.mrf.mxu0 }
 0x26b   : > { %v622_v35 = vadd.f32 %v857_v33, %v621_v34 }
 0x26c   : > { %v929_v36 = vpop.f32.mrf.mxu0 }
 0x26d   : > { %v625_v37 = vmax.f32 %v622_v35, 0.0 }
 0x26f   : > { %947 = vmatmul.mubr.msk.f32.vlgmr.msra.gmra.mxu0 %vm468_vm2, %v625_v37 }
 0x32f   : > { %v710_v39 = vpop.f32.mrf.mxu0 }
 0x330   : > { %v711_v40 = vadd.f32 %v859_v38, %v710_v39 }
 0x331   : > { %v948_v41 = vpop.f32.mrf.mxu0 }
 0x332   : > { %v714_v42 = vmul.f32 %v711_v40, %v711_v40 }
 0x334   : > { %v715_v43 = vsel %vm378_vm1, %v714_v42, 0.0 }
 0x335   : > { %716 = vadd.xlane.f32.xlu0 %v715_v43 }
 0x336   : > { %1010 = shalt.err (!%p1007_p3)
}
 0x337   : > { %s1011_s1 = scalar_lea.hbm %s753_s30, 128  ;;  %s1015_s29 = scalar_lea.hbm %s1390_s10, 256 }
 0x338   : > { %p1012_p4 = scmp.ne.s32.totalorder %s753_s30, %s1011_s1  ;;  %p1016_p9 = scmp.lt.s32.totalorder %s753_s30, %s1390_s10 }
 0x339   : > { %p1017_p10 = scmp.lt.s32.totalorder %s1015_s29, %s1011_s1 }
 0x33a   : > { %p1013_p7 = pnand %p1012_p4, %p1186_p5 }
 0x33b   : > { %p1018_p11 = por %p1017_p10, %p1016_p9 }
 0x33c   : > { %p1014_p8 = pneg %p1013_p7 }
 0x33e   : > { %p1019_p12 = pnand %p1018_p11, %p1014_p8 }
 0x340   : > { %1022 = shalt.err (!%p1019_p12)
}
 0x341   : > { %950 = dma.vmem_to_hbm [thread:$0]  (%p1186_p5), %s756_s11, 128, %s753_s30, %s729_s12  }
 0x342   : > { %s1401_s0 = sshll.u32 %s1270_s27, 3  ;;  %s1402_s2 = sshll.u32 %s1169_s17, 7 }
 0x343   : > { %s354_s28 = scalar_lea.vmem [#allocation2], %s1401_s0  ;;  %s740_s20 = scalar_lea.hbm %s1389_s9, %s1402_s2 }
 0x344   : > { %s742_s18 = sshll.u32 %s354_s28, 4  ;;  %s724_s21 = scalar_lea.sflag [#allocation3], %s1270_s27  ;;  %s743_s18 = int_to_ptr.vmem [resolvable:$true] %s742_s18 }
 0x345   : > { %s1023_s26 = scalar_lea.vmem %s743_s18, 128  ;;  %s1092_s30 = smov [#allocation2]  }
 0x346   : > { %p1024_p13 = scmp.ne.s32.totalorder %s743_s18, %s1023_s26  ;;  %s1027_s11 = sshll.u32 %s1092_s30, 4  ;;  %s1028_s11 = int_to_ptr.vmem [resolvable:$false] %s1027_s11 }
 0x347   : > { %s1029_s12 = scalar_lea.vmem %s1028_s11, 256  ;;  %p1030_p2 = scmp.lt.s32.totalorder %s743_s18, %s1028_s11 }
 0x348   : > { %p1025_p0 = pnand %p1024_p13, %p1186_p5  ;;  %p1031_p3 = scmp.lt.s32.totalorder %s1029_s12, %s1023_s26 }
 0x34a   : > { %p1026_p1 = pneg %p1025_p0  ;;  %p1032_p4 = por %p1031_p3, %p1030_p2 }
 0x34c   : > { %p1033_p7 = pnand %p1032_p4, %p1026_p1 }
 0x3be   : > { %v717_v44 = vpop.xlane.xlu0 %716 }
 0x3bf   : > { %v718_v45 = vmax.f32 %v717_v44, 1e-24 }
 0x3c1   : > { %995 = vrsqrt.f32 %v718_v45 }
 0x3ce   : > { %v996_v46 = vpop.eup %995 }
 0x3cf   : > { %v720_v47 = vmul.f32 %v996_v46, %v711_v40 }
 0x3d1   : > { %721 = vst.msk [vmem:[%s354_s28] sm:$0xff] %vm378_vm1, %v720_v47 }
 0x3d2   : > { %1036 = shalt.err (!%p1033_p7)
}
 0x3d3   : > { %s1037_s17 = scalar_lea.hbm %s740_s20, 128  ;;  %s1041_s0 = scalar_lea.hbm %s1389_s9, 256 }
 0x3d4   : > { %p1038_p8 = scmp.ne.s32.totalorder %s740_s20, %s1037_s17  ;;  %p1042_p11 = scmp.lt.s32.totalorder %s740_s20, %s1389_s9 }
 0x3d5   : > { %p1043_p12 = scmp.lt.s32.totalorder %s1041_s0, %s1037_s17 }
 0x3d6   : > { %p1039_p9 = pnand %p1038_p8, %p1186_p5 }
 0x3d7   : > { %p1044_p13 = por %p1043_p12, %p1042_p11 }
 0x3d8   : > { %p1040_p10 = pneg %p1039_p9 }
 0x3da   : > { %p1045_p0 = pnand %p1044_p13, %p1040_p10 }
 0x3dc   : > { %1048 = shalt.err (!%p1045_p0)
}
 0x3dd   : > { %949 = dma.vmem_to_hbm [thread:$0]  (%p1186_p5), %s743_s18, 128, %s740_s20, %s724_s21  }
 0x3de PF: > { %p960_p1 = scmp.ge.s32.totalorder %s1087_s16, 2  ;;  %s767_s1 = sand.u32 1, %s1075_s13  }
 0x3df   : > { %s768_s25 = scalar_lea.sflag [#allocation3], %s767_s1 }
 0x3e0   : > { %p954_p2 = pnand %p960_p1, %p1190_p6 }
 0x3e2   : > { %p955_p3 = pneg %p954_p2 }
 0x3e4   : > { %1066 = dma.done.wait (%p955_p3), %s768_s25, 128  }
 0x3e5   : > { %1068 = vsyncadd (%p955_p3), %s768_s25, 4294967168  ;;  %s777_s26 = scalar_lea.sflag [#allocation5], %s767_s1 }
 0x3e6   : > { %1070 = dma.done.wait (%p955_p3), %s777_s26, 128  }
 0x3e7   : > { %1072 = vsyncadd (%p955_p3), %s777_s26, 4294967168  ;;  %p24_p5 = scmp.ge.s32.totalorder %s1173_s19, 4   ;;  %s1403_s13 = smov %s1079_s14 }
 0x3e8   : > { %s1404_s14 = smov %s1083_s15  ;;  %s1405_s15 = smov %s1184_s22 }
 0x3e9   : > { %s1406_s16 = smov %s1173_s19  ;;  %26 = sbr.rel (!%p24_p5) target bundleno = 9 (0x9), region = 108 }
 0x3ee   :  { %782 = vsyncpa [#allocation3], 1 }
 0x3ef   :  { %784 = vsyncpa [#allocation3 + $0x1], 1 }
 0x3f0   :  { %785 = vsyncpa [#allocation5], 1 }
 0x3f1   :  { %787 = vsyncpa [#allocation5 + $0x1], 1 }

</bundles_post_ra>
